<compile_context>
chip_gen: v6e
topology: v6e:2x2x1
jax: 0.10.0
libtpu: 0.0.40
codegen_flags: <defaults>
</compile_context>

<pallas_src>
import jax
import jax.numpy as jnp
from jax.experimental import pallas as pl
from jax.experimental.pallas import tpu as pltpu


_LANE = 128                         # TPU lane width
_TARGET_STEP_BYTES = 16 * 1024 * 1024   # target x+y HBM traffic per grid step
_MIN_GRID_STEPS = 4                 # keep a few steps when M is large (megacore / pipelining)
_XLA_FALLBACK_BYTES = 256 * 1024    # below this, plain XLA dot beats kernel launch overhead


def _round_up(x, m):
    return (x + m - 1) // m * m


def _sublane(dtype):
    # f32 -> 8, bf16 -> 16, int8/fp8 -> 32 (packed sublane layout).
    return max(8, 32 // jnp.dtype(dtype).itemsize)


def _vmem_budgets():
    """Generation-aware VMEM budgets (128 MiB on v5e/v6e, 64 MiB per TC on v7x)."""
    cap = 64 * 1024 * 1024
    try:
        info = pltpu.get_tpu_info()
        cap = int(getattr(info, "vmem_capacity_bytes", cap) or cap)
    except Exception:
        pass
    tile_budget = int(cap * 0.55)   # counted against footprint below (headroom for Mosaic scratch)
    vmem_limit = int(cap * 0.75)    # scoped limit handed to Mosaic
    return tile_budget, vmem_limit


# ----------------------------- kernels ---------------------------------------


def _dense_kernel(x_ref, w_ref, b_ref, o_ref):
    # x_ref: (TM, D); w_ref: (D, N) pre-transposed once in the wrapper; b_ref: (1, N).
    acc = jnp.dot(x_ref[...], w_ref[...], preferred_element_type=jnp.float32)
    o_ref[...] = (acc + b_ref[...].astype(jnp.float32)).astype(o_ref.dtype)


def _dense_ktiled_kernel(x_ref, w_ref, b_ref, o_ref, acc_ref):
    # Used only when the (D, N) weight cannot stay fully resident in VMEM.
    k = pl.program_id(1)

    @pl.when(k == 0)
    def _():
        acc_ref[...] = jnp.zeros_like(acc_ref)

    acc_ref[...] += jnp.dot(x_ref[...], w_ref[...], preferred_element_type=jnp.float32)

    @pl.when(k == pl.num_programs(1) - 1)
    def _():
        o_ref[...] = (acc_ref[...] + b_ref[...].astype(jnp.float32)).astype(o_ref.dtype)


# --------------------------- tile selection -----------------------------------


def _pick_tm_resident(m, d, n, itemsize, sublane, tile_budget):
    """Row tile for the resident-weight path; fat steps, VMEM-accounted double buffers."""
    resident = 2 * (d * n + n) * itemsize            # Pallas double-buffers grid-invariant blocks too
    per_row = 2 * (d + n) * itemsize + 4 * n         # dbl-buffered x/y rows + f32 partials
    avail = max(tile_budget - resident, per_row * sublane)
    tm_fit = max(sublane, (avail // per_row) // sublane * sublane)
    tm_target = _round_up(max(1, _TARGET_STEP_BYTES // ((d + n) * itemsize)), sublane)
    tm = min(tm_fit, tm_target)
    if tm >= m:
        return m                                     # one full-extent block (legal for any m)
    # Keep >= _MIN_GRID_STEPS steps when there is enough work (v7x megacore + pipelining).
    if m * (d + n) * itemsize >= _MIN_GRID_STEPS * _TARGET_STEP_BYTES:
        tm = min(tm, _round_up(pl.cdiv(m, _MIN_GRID_STEPS), sublane))
    return max(tm, sublane)


def _pick_k_tiles(m, d, n, itemsize, sublane, tile_budget, tk_override):
    """(TM, TK) for the K-tiled accumulator path."""
    if tk_override is not None:
        tk = _round_up(int(tk_override), _LANE)
    else:
        tk = (tile_budget // 3) // max(1, 2 * n * itemsize)
        tk = max(_LANE, tk // _LANE * _LANE)
    tk = min(tk, _round_up(d, _LANE))
    resident = 2 * (tk * n + n) * itemsize
    per_row = 2 * (tk + n) * itemsize + 4 * n        # dbl-buffered x/y blocks + f32 accumulator
    avail = max(tile_budget - resident, per_row * sublane)
    tm = max(sublane, (avail // per_row) // sublane * sublane)
    if tm >= m:
        tm = m
    # TODO(synk): add an N grid axis (tiled output features) if even minimal (sublane, N)
    # output blocks plus the f32 accumulator exceed the VMEM budget for very large N.
    return tm, tk


# ------------------------------ wrapper ---------------------------------------


def _linear_pallas(x2, weight, bias, *, force_pallas=False, k_tile_override=None):
    """x2: (M, D); weight: (N, D) PyTorch layout; bias: (N,). Returns (M, N)."""
    m, d = x2.shape
    n = weight.shape[0]
    itemsize = jnp.dtype(x2.dtype).itemsize
    sublane = _sublane(x2.dtype)
    tile_budget, vmem_limit = _vmem_budgets()

    if (not force_pallas and k_tile_override is None
            and (m * d + m * n) * itemsize < _XLA_FALLBACK_BYTES):
        # Tiny problem: the fused XLA dot wins outright over kernel launch/pipeline cost.
        y = jnp.dot(x2, weight.T, preferred_element_type=jnp.float32) + bias
        return y.astype(x2.dtype)

    # One-time (N, D) -> (D, N) transpose: the weight is grid-invariant, so a single
    # wrapper transpose amortizes over all row tiles and guarantees the kernel never
    # re-transposes the resident weight on the XLU every grid step.
    w_t = weight.T
    b2 = bias.reshape(1, n)

    cost = pl.CostEstimate(flops=2 * m * d * n, transcendentals=0,
                           bytes_accessed=(m * d + d * n + n + m * n) * itemsize)

    weight_resident_bytes = 2 * (d * n + n) * itemsize     # double-buffered weight + bias
    use_k_tiling = (k_tile_override is not None
                    or weight_resident_bytes > tile_budget // 2)

    if not use_k_tiling:
        tm = _pick_tm_resident(m, d, n, itemsize, sublane, tile_budget)
        grid = (pl.cdiv(m, tm),)
        return pl.pallas_call(
            _dense_kernel,
            out_shape=jax.ShapeDtypeStruct((m, n), x2.dtype),
            grid_spec=pltpu.PrefetchScalarGridSpec(
                num_scalar_prefetch=0,
                grid=grid,
                in_specs=[
                    pl.BlockSpec((tm, d), lambda i: (i, 0)),   # pipelined x row tile
                    pl.BlockSpec((d, n), lambda i: (0, 0)),    # resident (D, N) weight
                    pl.BlockSpec((1, n), lambda i: (0, 0)),    # resident bias
                ],
                # Output left unpadded: masked tail lanes (if N % 128 != 0) cost less than
                # doubling output HBM writeback + a separate slice pass.
                out_specs=pl.BlockSpec((tm, n), lambda i: (i, 0)),
            ),
            compiler_params=pltpu.CompilerParams(
                dimension_semantics=("parallel",),             # independent row tiles
                vmem_limit_bytes=vmem_limit),
            cost_estimate=cost,
        )(x2, w_t, b2)

    # K-tiled path: weight too large to keep fully resident (e.g. big D*N on v7x's 64 MiB VMEM).
    tm, tk = _pick_k_tiles(m, d, n, itemsize, sublane, tile_budget, k_tile_override)
    d_pad = _round_up(d, tk)
    if d_pad != d:
        # Zero-padding keeps partial K tiles from folding uninitialized VMEM into the
        # accumulation; the pad fraction is <= tk/d, tiny whenever this path is used.
        x2 = jnp.pad(x2, ((0, 0), (0, d_pad - d)))
        w_t = jnp.pad(w_t, ((0, d_pad - d), (0, 0)))
    grid = (pl.cdiv(m, tm), d_pad // tk)
    return pl.pallas_call(
        _dense_ktiled_kernel,
        out_shape=jax.ShapeDtypeStruct((m, n), x2.dtype),
        grid_spec=pltpu.PrefetchScalarGridSpec(
            num_scalar_prefetch=0,
            grid=grid,
            in_specs=[
                pl.BlockSpec((tm, tk), lambda i, k: (i, k)),
                pl.BlockSpec((tk, n), lambda i, k: (k, 0)),
                pl.BlockSpec((1, n), lambda i, k: (0, 0)),
            ],
            out_specs=pl.BlockSpec((tm, n), lambda i, k: (i, 0)),
            scratch_shapes=[pltpu.VMEM((tm, n), jnp.float32)],
        ),
        compiler_params=pltpu.CompilerParams(
            dimension_semantics=("parallel", "arbitrary"),
            vmem_limit_bytes=vmem_limit),
        cost_estimate=cost,
    )(x2, w_t, b2)


def time_distributed_dense(x, weight, bias, *, force_pallas=False):
    """TimeDistributed(nn.Linear) forward, batch_first=False.

    x: (seq, batch, ..., input_size) or (<=2)-D; weight: (out, in); bias: (out,).
    """
    n = weight.shape[0]
    if x.ndim <= 2:
        # PyTorch: module(x) directly for ndim <= 2.
        x2 = x if x.ndim == 2 else x.reshape(1, -1)
        y2 = _linear_pallas(x2, weight, bias, force_pallas=force_pallas)
        return y2 if x.ndim == 2 else y2.reshape(n)

    x2 = x.reshape(-1, x.shape[-1])                  # (-1, INPUT_SIZE)
    y2 = _linear_pallas(x2, weight, bias, force_pallas=force_pallas)
    # batch_first=False path: y.view(-1, x.size(1), y.size(-1))
    return y2.reshape(-1, x.shape[1], n)


if __name__ == "__main__":
    INPUT_SIZE = 32
    OUTPUT_SIZE = 64
    SEQ, BATCH = 8, 2

    key = jax.random.PRNGKey(0)
    kx, kw, kb, kx2, kw2, kb2 = jax.random.split(key, 6)

    # --- Test 1: TimeDistributed(Linear) on (seq, batch, in): resident-weight path ---
    x = jax.random.normal(kx, (SEQ, BATCH, INPUT_SIZE), dtype=jnp.float32)
    bound = 1.0 / (INPUT_SIZE ** 0.5)
    weight = jax.random.uniform(kw, (OUTPUT_SIZE, INPUT_SIZE),
                                minval=-bound, maxval=bound, dtype=jnp.float32)
    bias = jax.random.uniform(kb, (OUTPUT_SIZE,),
                              minval=-bound, maxval=bound, dtype=jnp.float32)

    y = time_distributed_dense(x, weight, bias, force_pallas=True)
    jax.block_until_ready(y)
    y_ref = (x.reshape(-1, INPUT_SIZE) @ weight.T + bias).reshape(-1, BATCH, OUTPUT_SIZE)
    assert y.shape == (SEQ, BATCH, OUTPUT_SIZE)
    assert jnp.allclose(y, y_ref, atol=1e-5, rtol=1e-5)

    # --- Test 2: exercise the K-tiled accumulator path (forced small K tile) ---
    M2, D2, N2 = 24, 256, 48
    x_k = jax.random.normal(kx2, (M2, D2), dtype=jnp.float32)
    w_k = jax.random.normal(kw2, (N2, D2), dtype=jnp.float32) * 0.05
    b_k = jax.random.normal(kb2, (N2,), dtype=jnp.float32)
    y_k = _linear_pallas(x_k, w_k, b_k, k_tile_override=128)
    jax.block_until_ready(y_k)
    y_k_ref = x_k @ w_k.T + b_k
    assert jnp.allclose(y_k, y_k_ref, atol=1e-4, rtol=1e-4)

    print("KERNEL_OK")
</pallas_src>

<mosaic_0001>
module attributes {stable_mosaic.version = 11 : i64} {
  func.func @_dense_kernel(%arg0: i32, %arg1: memref<16x32xf32, #tpu.memory_space<vmem>>, %arg2: memref<32x64xf32, #tpu.memory_space<vmem>>, %arg3: memref<1x64xf32, #tpu.memory_space<vmem>>, %arg4: memref<16x64xf32, #tpu.memory_space<vmem>>) attributes {dimension_semantics = [#tpu.dimension_semantics<parallel>], iteration_bounds = array<i64: 1>, scalar_prefetch = 0 : i64, scratch_operands = 0 : i64, tpu.core_type = #tpu.core_type<tc>, window_params = [{transform_indices = @transform_0, window_bounds = array<i64: 16, 32>}, {pipeline_mode = #tpu.pipeline_mode<synchronous>, transform_indices = @transform_1, window_bounds = array<i64: 32, 64>}, {pipeline_mode = #tpu.pipeline_mode<synchronous>, transform_indices = @transform_2, window_bounds = array<i64: 1, 64>}, {transform_indices = @transform_3, window_bounds = array<i64: 16, 64>}]} {
    %c0 = arith.constant 0 : index
    %c0_0 = arith.constant 0 : index
    %0 = vector.load %arg1[%c0, %c0_0] : memref<16x32xf32, #tpu.memory_space<vmem>>, vector<16x32xf32>
    %c0_1 = arith.constant 0 : index
    %c0_2 = arith.constant 0 : index
    %1 = vector.load %arg2[%c0_1, %c0_2] : memref<32x64xf32, #tpu.memory_space<vmem>>, vector<32x64xf32>
    %cst = arith.constant dense<0.000000e+00> : vector<16x64xf32>
    %2 = tpu.matmul %0, %1, %cst {dimension_numbers = #tpu.dot_dimension_numbers<[1], [0], [0], [1], [0, 0, 1, 1], [], []>} : vector<16x32xf32>, vector<32x64xf32>, vector<16x64xf32> -> vector<16x64xf32>
    %c0_3 = arith.constant 0 : index
    %c0_4 = arith.constant 0 : index
    %3 = vector.load %arg3[%c0_3, %c0_4] : memref<1x64xf32, #tpu.memory_space<vmem>>, vector<1x64xf32>
    %4 = vector.broadcast %3 : vector<1x64xf32> to vector<16x64xf32>
    %5 = arith.addf %2, %4 : vector<16x64xf32>
    %c0_5 = arith.constant 0 : index
    %c0_6 = arith.constant 0 : index
    %6 = vector.load %arg4[%c0_5, %c0_6] : memref<16x64xf32, #tpu.memory_space<vmem>>, vector<16x64xf32>
    tpu.vector_store %arg4[%c0_5, %c0_6], %5 {strides = array<i32>} : memref<16x64xf32, #tpu.memory_space<vmem>>, vector<16x64xf32>,
    return
  }
  func.func @transform_0(%arg0: i32) -> (i32, i32) {
    %c0_i32 = arith.constant 0 : i32
    %c0_i32_0 = arith.constant 0 : i32
    return %arg0, %c0_i32 : i32, i32
  }
  func.func @transform_1(%arg0: i32) -> (i32, i32) {
    %c0_i32 = arith.constant 0 : i32
    %c0_i32_0 = arith.constant 0 : i32
    %c0_i32_1 = arith.constant 0 : i32
    return %c0_i32, %c0_i32_0 : i32, i32
  }
  func.func @transform_2(%arg0: i32) -> (i32, i32) {
    %c0_i32 = arith.constant 0 : i32
    %c0_i32_0 = arith.constant 0 : i32
    %c0_i32_1 = arith.constant 0 : i32
    return %c0_i32, %c0_i32_0 : i32, i32
  }
  func.func @transform_3(%arg0: i32) -> (i32, i32) {
    %c0_i32 = arith.constant 0 : i32
    %c0_i32_0 = arith.constant 0 : i32
    return %arg0, %c0_i32 : i32, i32
  }
}

</mosaic_0001>

<bundles_post_ra>
// kernel: tpu_custom_call.1
= control target key start
LH: loop header
LB: loop body
LE: loop exit
PB: predicated region body
PF: predicated region fallthrough
CT: control target
= control target key end

     0   :  { %8 = vsyncpa [#allocation3], 0  ;;  %s298_s0 = inlined_call_operand.hbm [shape: f32[16,32], index: 0, kind: input, shape index: {}]   ;;  %s299_s1 = inlined_call_operand.hbm [shape: f32[32,64], index: 1, kind: input, shape index: {}]   ;;  %s300_s2 = inlined_call_operand.vmem [shape: f32[1,64], index: 2, kind: input, shape index: {}]   ;;  %s301_s3 = inlined_call_operand.hbm [shape: f32[16,64], index: 3, kind: output, shape index: {}]  }
   0x1   :  { %9 = vsyncpa [#allocation6], 0 }
   0x2   :  { %10 = vsyncpa [#allocation4], 0  ;;  %s250_s12 = smov [#allocation2]  }
   0x3   :  { %s16_s13 = sshll.u32 %s250_s12, 4  ;;  %s17_s13 = int_to_ptr.vmem [resolvable:$true] %s16_s13 }
   0x4   :  { %s192_s14 = scalar_lea.vmem %s17_s13, 256  ;;  %p197_p1 = scmp.lt.s32.totalorder %s17_s13, %s17_s13 }
   0x5   :  { %p193_p0 = scmp.ne.s32.totalorder %s17_s13, %s192_s14  ;;  %p198_p2 = scmp.lt.s32.totalorder %s192_s14, %s192_s14 }
   0x7   :  { %p199_p3 = por %p198_p2, %p197_p1 }
   0x9   :  { %p200_p4 = pnand %p199_p3, %p193_p0 }
   0xb   :  { %203 = shalt.err (!%p200_p4)
}
   0xc   :  { %s251_s15 = smov 128   ;;  %s252_s16 = smov 8  }
   0xd   :  { %22 = dma.hbm_to_vmem [thread:$0]  %s298_s0, 256, %s17_s13, [#allocation3], %s251_s15, %s251_s15, %s252_s16  }
   0xe   :  { %s253_s19 = smov [#allocation5]  }
   0xf   :  { %s28_s20 = sshll.u32 %s253_s19, 4  ;;  %s29_s20 = int_to_ptr.vmem [resolvable:$true] %s28_s20 }
  0x10   :  { %s212_s21 = scalar_lea.vmem %s29_s20, 512  ;;  %p217_p6 = scmp.lt.s32.totalorder %s29_s20, %s29_s20 }
  0x11   :  { %p213_p5 = scmp.ne.s32.totalorder %s29_s20, %s212_s21  ;;  %p218_p7 = scmp.lt.s32.totalorder %s212_s21, %s212_s21 }
  0x13   :  { %p219_p8 = por %p218_p7, %p217_p6 }
  0x15   :  { %p220_p9 = pnand %p219_p8, %p213_p5 }
  0x17   :  { %223 = shalt.err (!%p220_p9)
}
  0x18   :  { %34 = dma.hbm_to_vmem [thread:$0]  %s299_s1, 512, %s29_s20, [#allocation6], %s251_s15, %s251_s15, %s252_s16  }
  0x19   :  { %244 = dma.done.wait [#allocation3], 256  }
  0x1a   :  { %245 = vsyncadd [#allocation3], 4294967040 }
  0x1b   :  { %246 = dma.done.wait [#allocation6], 512  }
  0x1c   :  { %247 = vsyncadd [#allocation6], 4294966784  ;;  %vm56_vm0 = vcmask 261120   ;;  %v48_v0 = vld [vmem:[#allocation5 + $0x18] sm:$0xff]  ;;  %v47_v1 = vld [vmem:[#allocation5 + $0x10] sm:$0xff]  ;;  %vm138_vm1 = vcmask 523264  }
  0x1d   :  { %168 = vmatprep.subr.mxu0 %v48_v0  ;;  %v43_v2 = vld [vmem:[#allocation2] sm:$0xff]  ;;  %v46_v3 = vld [vmem:[#allocation5 + $0x8] sm:$0xff]  ;;  %v45_v4 = vld [vmem:[#allocation5] sm:$0xff]  ;;  %s254_s24 = smov [#allocation7]  }
  0x1e   :  { %169 = vmatpush3.msra.mxu0 %v48_v0  ;;  %176 = vmatprep.mubr.msk.f32.mxu0 %vm56_vm0, %v43_v2  ;;  %v44_v5 = vld [vmem:[#allocation2 + $0x8] sm:$0xff]  ;;  %v159_v6 = vld [vmem:[%s300_s2] ss:$0 sm:$0xff]  ;;  %s146_s25 = sshll.u32 %s254_s24, 4  ;;  %s147_s25 = int_to_ptr.vmem [resolvable:$true] %s146_s25 }
  0x1f   :  { %170 = vmatprep.subr.mxu0 %v47_v1  ;;  %s224_s26 = scalar_lea.vmem %s147_s25, 256  ;;  %p229_p11 = scmp.lt.s32.totalorder %s147_s25, %s147_s25 }
  0x20   :  { %171 = vmatpush3.msra.mxu0 %v47_v1  ;;  %p225_p10 = scmp.ne.s32.totalorder %s147_s25, %s224_s26  ;;  %p230_p12 = scmp.lt.s32.totalorder %s224_s26, %s224_s26 }
  0x21   :  { %172 = vmatprep.subr.mxu0 %v46_v3 }
  0x22   :  { %173 = vmatpush3.msra.mxu0 %v46_v3  ;;  %p231_p13 = por %p230_p12, %p229_p11 }
  0x23   :  { %174 = vmatprep.subr.mxu0 %v45_v4 }
  0x24   :  { %175 = vmatpush3.msra.mxu0 %v45_v4  ;;  %p232_p0 = pnand %p231_p13, %p225_p10 }
  0x25   :  { %177 = vmatmul.mubr.msk.f32.vlgmr.msra.gmra.mxu0 %vm56_vm0, %v44_v5 }
  0xe5   :  { %v178_v7 = vpop.f32.mrf.mxu0 }
  0xe6   :  { %v135_v8 = vadd.f32 %v178_v7, %v159_v6 }
  0xe7   :  { %v129_v9 = vpop.f32.mrf.mxu0 }
  0xe8   :  { %v130_v10 = vadd.f32 %v159_v6, %v129_v9  ;;  %140 = vst.msk [vmem:[#allocation7 + $0x8] sm:$0xff] %vm138_vm1, %v135_v8 }
  0xea   :  { %139 = vst.msk [vmem:[#allocation7] sm:$0xff] %vm138_vm1, %v130_v10 }
  0xeb   :  { %235 = shalt.err (!%p232_p0)
}
  0xec   :  { %152 = dma.vmem_to_hbm [thread:$0]  %s147_s25, 256, %s301_s3, [#allocation4], %s251_s15, %s251_s15, %s252_s16  }
  0xed   :  { %248 = dma.done.wait [#allocation4], 256  }
  0xee   :  { %249 = vsyncadd [#allocation4], 4294967040 }
  0xef   :  { %156 = vsyncpa [#allocation3], 1 }
  0xf0   :  { %157 = vsyncpa [#allocation6], 1 }
  0xf1   :  { %158 = vsyncpa [#allocation4], 1 }

</bundles_post_ra>
